<compile_context>
chip_gen: v5e
topology: v5e:2x2
jax: 0.10.0
libtpu: 0.0.40
codegen_flags: <defaults>
</compile_context>

<pallas_src>
import jax
import jax.numpy as jnp
from jax import lax
from jax.experimental import pallas as pl
from jax.experimental.pallas import tpu as pltpu


def _selfexpr_matmul_kernel(w_ref, x_ref, o_ref):
    # Mask the diagonal in-kernel (stateless; exact reference semantics,
    # including NaN/inf on the diagonal), then matmul against one lane-dense
    # column tile of x.  For small n this is a single vreg of VPU work.
    w = w_ref[...]
    n = w.shape[0]
    rows = lax.broadcasted_iota(jnp.int32, (n, n), 0)
    cols = lax.broadcasted_iota(jnp.int32, (n, n), 1)
    w_nodiag = w - jnp.where(rows == cols, w, jnp.zeros_like(w))
    o_ref[...] = jnp.dot(
        w_nodiag, x_ref[...], preferred_element_type=jnp.float32
    ).astype(o_ref.dtype)


def _vmem_budget_bytes():
    """Generation-aware VMEM budget (conservative fallback sized for v7x)."""
    cap = None
    try:
        info = pltpu.get_tpu_info()
        cap = getattr(info, "vmem_capacity_bytes", None)
    except Exception:
        cap = None
    if cap is None or cap <= 0:
        cap = 64 << 20  # assume the smallest (v7x: 64 MiB physical)
    # 3/4 of capacity, never above 96 MiB (v5e/v6e have 128 MiB physical).
    return int(min((3 * cap) // 4, 96 << 20))


def _padded_weight_bytes(n, itemsize):
    # Weight tile is padded to (8, 128) layout granularity in VMEM.
    return ((n + 7) // 8 * 8) * ((n + 127) // 128 * 128) * itemsize


def _pick_td(n, d, itemsize=4, target_x_tile_bytes=4 << 20, vmem_budget=None):
    """Byte-based column-tile selection.

    Aim for ~`target_x_tile_bytes` of x per tile (big DMAs, few grid steps),
    clamped so that the single-buffered weight plus double-buffered x and out
    tiles fit in the VMEM budget.  Widths are multiples of 128 (lane-dense,
    unmasked stores) unless a single full-extent block covers all of d.
    """
    if vmem_budget is None:
        vmem_budget = _vmem_budget_bytes()

    # Per tiled column: x (double-buffered) + out (double-buffered).
    bytes_per_col = 4 * n * itemsize
    w_bytes = _padded_weight_bytes(n, itemsize)  # single-buffered, resident
    avail = max(vmem_budget - w_bytes, 4 * 128 * n * itemsize)

    cap_budget = avail // max(bytes_per_col, 1)
    cap_target = max(target_x_tile_bytes // max(n * itemsize, 1), 128)
    cap = max(128, min(cap_budget, cap_target))

    if d <= cap:
        return d  # single grid step; full-extent last dim is always legal
    return max(128, (cap // 128) * 128)


def selfexpr_forward(weight, x, *, td=None, allow_xla_fast_path=True):
    """weight: (n, n) f32, x: (n, d) f32  ->  (weight, output (n, d))."""
    n, n2 = weight.shape
    assert n == n2
    n_x, d = x.shape
    assert n_x == n
    itemsize = x.dtype.itemsize

    # Tiny-problem fast path: below ~512 KiB of x+out traffic the pallas_call
    # fixed overhead dominates; the plain XLA fusion is strictly faster.
    if allow_xla_fast_path and (2 * n * d * itemsize) <= (512 << 10):
        w_nodiag = weight - jnp.diag(jnp.diagonal(weight))
        return weight, jnp.dot(
            w_nodiag, x, preferred_element_type=jnp.float32
        ).astype(x.dtype)

    vmem_limit = _vmem_budget_bytes()
    # Leave a little of the scoped limit for compiler-internal scratch.
    tile_budget = max(vmem_limit - (4 << 20), vmem_limit // 2)

    auto_td = _pick_td(n, d, itemsize=itemsize, vmem_budget=tile_budget)
    if td is None:
        td = auto_td
    else:
        # Clamp a manually supplied td so it cannot blow the VMEM budget.
        td = min(td, d, max(auto_td, 128))
        if td != d and td % 128 != 0:
            td = max(128, (td // 128) * 128)
    grid_d = pl.cdiv(d, td)

    out = pl.pallas_call(
        _selfexpr_matmul_kernel,
        out_shape=jax.ShapeDtypeStruct((n, d), x.dtype),
        grid_spec=pltpu.PrefetchScalarGridSpec(
            num_scalar_prefetch=0,
            grid=(grid_d,),
            in_specs=[
                # Full weight; constant block index -> fetched once, resident.
                # Single-buffered: the second pipeline buffer would be dead.
                pl.BlockSpec((n, n), lambda j: (0, 0),
                             pipeline_mode=pl.Buffered(1)),
                # Large lane-dense column tile of x.
                pl.BlockSpec((n, td), lambda j: (0, j)),
            ],
            out_specs=pl.BlockSpec((n, td), lambda j: (0, j)),
        ),
        compiler_params=pltpu.CompilerParams(
            dimension_semantics=("parallel",),
            vmem_limit_bytes=vmem_limit,
        ),
        cost_estimate=pl.CostEstimate(
            flops=2 * n * n * d,
            bytes_accessed=itemsize * (n * n + 2 * n * d),
            transcendentals=0,
        ),
    )(weight, x)
    return weight, out


def _reference(weight, x):
    w_nodiag = weight - jnp.diag(jnp.diagonal(weight))
    return weight, w_nodiag @ x


if __name__ == "__main__":
    key = jax.random.PRNGKey(0)
    k_w, k_x = jax.random.split(key)

    n = 8          # number of samples in the self-expression layer
    d = 256        # feature dimension of the input matrix

    # Deterministic init mirroring torch: weight ~ U(0, 0.01), shape (n, n)
    weight = jax.random.uniform(k_w, (n, n), dtype=jnp.float32,
                                minval=0.0, maxval=0.01)
    x = jax.random.normal(k_x, (n, d), dtype=jnp.float32)

    w_ref, out_ref = _reference(weight, x)

    # Default path (tiny problem -> XLA fast path).
    w_fast, out_fast = selfexpr_forward(weight, x)
    jax.block_until_ready(out_fast)
    assert jnp.allclose(w_fast, w_ref)
    assert jnp.allclose(out_fast, out_ref, atol=1e-5, rtol=1e-5), (
        float(jnp.max(jnp.abs(out_fast - out_ref)))
    )

    # Force the Pallas kernel path to verify it compiles and runs on TPU.
    w_out, out = selfexpr_forward(weight, x, allow_xla_fast_path=False)
    jax.block_until_ready(out)
    assert jnp.allclose(w_out, w_ref)
    assert jnp.allclose(out, out_ref, atol=1e-5, rtol=1e-5), (
        float(jnp.max(jnp.abs(out - out_ref)))
    )

    print("KERNEL_OK")
</pallas_src>

<mosaic_0001>
module attributes {stable_mosaic.version = 11 : i64} {
  func.func @_selfexpr_matmul_kernel(%arg0: i32, %arg1: memref<8x8xf32, #tpu.memory_space<vmem>>, %arg2: memref<8x256xf32, #tpu.memory_space<vmem>>, %arg3: memref<8x256xf32, #tpu.memory_space<vmem>>) attributes {dimension_semantics = [#tpu.dimension_semantics<parallel>], iteration_bounds = array<i64: 1>, scalar_prefetch = 0 : i64, scratch_operands = 0 : i64, tpu.core_type = #tpu.core_type<tc>, window_params = [{pipeline_mode = #tpu.pipeline_mode<synchronous>, transform_indices = @transform_0, window_bounds = array<i64: 8, 8>}, {transform_indices = @transform_1, window_bounds = array<i64: 8, 256>}, {transform_indices = @transform_2, window_bounds = array<i64: 8, 256>}]} {
    %c0 = arith.constant 0 : index
    %c0_0 = arith.constant 0 : index
    %0 = vector.load %arg1[%c0, %c0_0] : memref<8x8xf32, #tpu.memory_space<vmem>>, vector<8x8xf32>
    %1 = tpu.iota {dimensions = array<i32: 0>} : vector<8x8xi32>
    %2 = tpu.iota {dimensions = array<i32: 1>} : vector<8x8xi32>
    %3 = arith.cmpi eq, %1, %2 : vector<8x8xi32>
    %cst = arith.constant 0.000000e+00 : f32
    %4 = vector.broadcast %cst : f32 to vector<8x8xf32>
    %5 = arith.select %3, %0, %4 : vector<8x8xi1>, vector<8x8xf32>
    %6 = arith.subf %0, %5 : vector<8x8xf32>
    %c0_1 = arith.constant 0 : index
    %c0_2 = arith.constant 0 : index
    %7 = vector.load %arg2[%c0_1, %c0_2] : memref<8x256xf32, #tpu.memory_space<vmem>>, vector<8x256xf32>
    %cst_3 = arith.constant dense<0.000000e+00> : vector<8x256xf32>
    %8 = tpu.matmul %6, %7, %cst_3 {dimension_numbers = #tpu.dot_dimension_numbers<[1], [0], [0], [1], [0, 0, 1, 1], [], []>} : vector<8x8xf32>, vector<8x256xf32>, vector<8x256xf32> -> vector<8x256xf32>
    %c0_4 = arith.constant 0 : index
    %c0_5 = arith.constant 0 : index
    %9 = vector.load %arg3[%c0_4, %c0_5] : memref<8x256xf32, #tpu.memory_space<vmem>>, vector<8x256xf32>
    tpu.vector_store %arg3[%c0_4, %c0_5], %8 {strides = array<i32>} : memref<8x256xf32, #tpu.memory_space<vmem>>, vector<8x256xf32>,
    return
  }
  func.func @transform_0(%arg0: i32) -> (i32, i32) {
    %c0_i32 = arith.constant 0 : i32
    %c0_i32_0 = arith.constant 0 : i32
    %c0_i32_1 = arith.constant 0 : i32
    return %c0_i32, %c0_i32_0 : i32, i32
  }
  func.func @transform_1(%arg0: i32) -> (i32, i32) {
    %c0_i32 = arith.constant 0 : i32
    %c0_i32_0 = arith.constant 0 : i32
    return %c0_i32, %arg0 : i32, i32
  }
  func.func @transform_2(%arg0: i32) -> (i32, i32) {
    %c0_i32 = arith.constant 0 : i32
    %c0_i32_0 = arith.constant 0 : i32
    return %c0_i32, %arg0 : i32, i32
  }
}

</mosaic_0001>

<bundles_post_ra>
// kernel: tpu_custom_call.1
= control target key start
LH: loop header
LB: loop body
LE: loop exit
PB: predicated region body
PF: predicated region fallthrough
CT: control target
= control target key end

     0   :  { %7 = vsyncpa [#allocation3], 0  ;;  %s224_s0 = inlined_call_operand.hbm [shape: f32[8,8], index: 0, kind: input, shape index: {}]   ;;  %s225_s1 = inlined_call_operand.hbm [shape: f32[8,256], index: 1, kind: input, shape index: {}]   ;;  %s226_s2 = inlined_call_operand.hbm [shape: f32[8,256], index: 2, kind: output, shape index: {}]  }
   0x1   :  { %8 = vsyncpa [#allocation6], 0 }
   0x2   :  { %9 = vsyncpa [#allocation4], 0  ;;  %s15_s11 = sshll.u32 %s224_s0, 4  ;;  %s197_s12 = smov [#allocation2]   ;;  %s16_s11 = int_to_ptr.hbm [resolvable:$true] %s15_s11 }
   0x3   :  { %s17_s13 = sshll.u32 %s197_s12, 4  ;;  %s26_s16 = sshll.u32 %s225_s1, 4  ;;  %s18_s13 = int_to_ptr.vmem [resolvable:$true] %s17_s13  ;;  %s27_s16 = int_to_ptr.hbm [resolvable:$true] %s26_s16 }
   0x4   :  { %20 = dma.hbm_to_vmem [thread:$0]  %s16_s11, 128, %s18_s13, [#allocation3]  }
   0x5   :  { %s198_s17 = smov [#allocation5]  }
   0x6   :  { %s28_s18 = sshll.u32 %s198_s17, 4  ;;  %s29_s18 = int_to_ptr.vmem [resolvable:$true] %s28_s18 }
   0x7   :  { %31 = dma.hbm_to_vmem [thread:$0]  %s27_s16, 256, %s29_s18, [#allocation6]  }
   0x8   :  { %191 = dma.done.wait [#allocation3], 128  }
   0x9   :  { %192 = vsyncadd [#allocation3], 4294967168 }
   0xa   :  { %193 = dma.done.wait [#allocation6], 256  }
   0xb   :  { %194 = vsyncadd [#allocation6], 4294967040  ;;  %v41_v0 = vlaneseq  ;;  %v48_v3 = vld [vmem:[#allocation5] sm:$0xff]  ;;  %v49_v4 = vld [vmem:[#allocation5 + $0x8] sm:$0xff]  ;;  %vm50_vm1 = vcmask 64512   ;;  %s199_s0 = smov [#allocation7]  }
   0xc   :  { %v40_v5 = vld [vmem:[#allocation2] sm:$0xff]  ;;  %69 = vmatpush.msra.mxu0 %v48_v3  ;;  %89 = vmatpush.msra.mxu1 %v49_v4  ;;  %s101_s1 = sshll.u32 %s199_s0, 4  ;;  %s103_s21 = sshll.u32 %s226_s2, 4  ;;  %s102_s1 = int_to_ptr.vmem [resolvable:$true] %s101_s1  ;;  %s104_s21 = int_to_ptr.hbm [resolvable:$true] %s103_s21 }
   0xd   :  { %v42_v1 = vshrl.u32 %v41_v0, 7  ;;  %v44_v2 = vand.u32 127, %v41_v0 }
   0xf   :  { %vm45_vm0 = vcmp.eq.s32.totalorder %v42_v1, %v44_v2 }
  0x10   :  { %v46_v6 = vsel %vm45_vm0, %v40_v5, 0.0 }
  0x11   :  { %v47_v7 = vsub.f32 %v40_v5, %v46_v6 }
  0x13   :  { %114 = vmatmul.msk.f32.vlgmr.msra.gmra.mxu0 %vm50_vm1, %v47_v7  ;;  %115 = vmatmul.msk.f32.vlgmr.msra.gmra.mxu1 %vm50_vm1, %v47_v7 }
  0x90   :  { %v71_v8 = vpop.f32.mrf.mxu0  ;;  %v91_v9 = vpop.f32.mrf.mxu1 }
  0x91   :  { %94 = vst [vmem:[#allocation7] sm:$0xff] %v71_v8 }
  0x92   :  { %95 = vst [vmem:[#allocation7 + $0x8] sm:$0xff] %v91_v9 }
  0x93   :  { %106 = dma.vmem_to_hbm [thread:$0]  %s102_s1, 256, %s104_s21, [#allocation4]  }
  0x94   :  { %195 = dma.done.wait [#allocation4], 256  }
  0x95   :  { %196 = vsyncadd [#allocation4], 4294967040 }
  0x96   :  { %111 = vsyncpa [#allocation3], 1 }
  0x97   :  { %112 = vsyncpa [#allocation6], 1 }
  0x98   :  { %113 = vsyncpa [#allocation4], 1 }

</bundles_post_ra>
